<compile_context>
chip_gen: v7x
topology: tpu7x:2x2x1
jax: 0.10.0
libtpu: 0.0.40
codegen_flags: <defaults>
</compile_context>

<pallas_src>
import functools

import jax
import jax.numpy as jnp
from jax.experimental import pallas as pl
from jax.experimental.pallas import tpu as pltpu

_LANE = 128
# Minimum sublane multiple per element width (f32: 8, bf16: 16, int8/fp8: 32).
_MIN_SUBLANES = {4: 8, 2: 16, 1: 32}

# Block-size budget: ~2 MiB ceiling / ~1 MiB floor. With input + output each
# double-buffered that is <= 8 MiB of VMEM -> fits the default scoped limit on
# every generation, so no vmem_limit_bytes override is needed.
_BLOCK_BYTES_HI = 2 << 20
_BLOCK_BYTES_LO = 1 << 20
_MIN_GRID_STEPS = 8  # target >= ~8 steps on big inputs (v7x 2 TCs + pipelining)


def _bound_sigmoid_kernel(x_ref, o_ref, *, lo, hi):
    x = x_ref[...]
    # Compute in f32 for accuracy; the kernel is HBM-bound and the EUP slot
    # has slack, so the upcast is free. Scale/shift into [lo, hi], cast back.
    y = jax.nn.sigmoid(x.astype(jnp.float32)) * (hi - lo) + lo
    o_ref[...] = y.astype(o_ref.dtype)


def _round_down(v, m):
    return (v // m) * m


def _round_up(v, m):
    return ((v + m - 1) // m) * m


def _pick_width(n, sub):
    """Widest lane-dense slab width that divides n (prefer >= `sub` rows)."""
    candidates = (8192, 4096, 2048, 1024, 512, 256, 128)
    for w in candidates:
        if n % w == 0 and n // w >= sub:
            return w
    for w in candidates:
        if n % w == 0:
            return w
    return None


def _pick_tile(rows, width, itemsize, sub):
    """Rows per block: ~1-2 MiB, multiple of `sub`, >= ~8 grid steps if big."""
    row_bytes = width * itemsize
    hi = max(sub, _round_down(_BLOCK_BYTES_HI // row_bytes, sub))
    lo = max(sub, _round_down(_BLOCK_BYTES_LO // row_bytes, sub))
    steps = max(sub, _round_up(pl.cdiv(rows, _MIN_GRID_STEPS), sub))
    tile = max(lo, min(hi, steps))
    if rows <= sub:
        return rows  # block dim == full array dim (allowed by the tiling rule)
    return max(sub, min(tile, _round_down(rows, sub)))


def _run(slab, lo, hi, tile):
    rows, width = slab.shape
    grid = (pl.cdiv(rows, tile),)  # partial trailing block is masked by Pallas
    kernel = functools.partial(_bound_sigmoid_kernel, lo=lo, hi=hi)
    return pl.pallas_call(
        kernel,
        out_shape=jax.ShapeDtypeStruct((rows, width), slab.dtype),
        grid_spec=pltpu.PrefetchScalarGridSpec(
            num_scalar_prefetch=0,
            grid=grid,
            in_specs=[pl.BlockSpec((tile, width), lambda i: (i, 0))],
            out_specs=pl.BlockSpec((tile, width), lambda i: (i, 0)),
        ),
        compiler_params=pltpu.CompilerParams(
            dimension_semantics=("parallel",),
        ),
    )(slab)


def bound_sigmoid(x, out_range):
    """Pallas TPU forward of BoundSigmoid: sigmoid(x) * (hi - lo) + lo."""
    lo, hi = float(out_range[0]), float(out_range[1])
    assert lo < hi

    orig_shape = x.shape
    dtype = x.dtype
    n = x.size
    itemsize = jnp.dtype(dtype).itemsize
    sub = _MIN_SUBLANES.get(itemsize, 8)

    width = _pick_width(n, sub)
    if width is not None:
        # Fast path: copy-free contiguous reshape, no pad, no trailing slice.
        rows = n // width
        slab = x.reshape(rows, width)
        tile = _pick_tile(rows, width, itemsize, sub)
        out = _run(slab, lo, hi, tile)
        return out.reshape(orig_shape)

    # Ragged path (n % 128 != 0): pad the flat array up to a multiple of 128.
    # TODO(synk): handle the <128-element tail with a masked store instead of
    # the full-array pad/slice copies (rare path; fast path above is copy-free).
    width = _LANE
    n_pad = _round_up(n, width)
    flat = jnp.pad(x.reshape(-1), (0, n_pad - n))
    rows = n_pad // width
    slab = flat.reshape(rows, width)
    tile = _pick_tile(rows, width, itemsize, sub)
    out = _run(slab, lo, hi, tile)
    return out.reshape(-1)[:n].reshape(orig_shape)


if __name__ == "__main__":
    out_range = (-1.5, 2.5)
    scale = out_range[1] - out_range[0]

    # NCHW-like input consistent with typical usage (elementwise op).
    x = jax.random.normal(jax.random.PRNGKey(0), (2, 4, 16, 16), dtype=jnp.float32)
    y = bound_sigmoid(x, out_range)
    jax.block_until_ready(y)
    y_ref = jax.nn.sigmoid(x) * scale + out_range[0]
    assert y.shape == x.shape and y.dtype == x.dtype
    assert jnp.allclose(y, y_ref, atol=1e-6, rtol=1e-6)

    # Ragged size: exercises the pad path and a masked partial trailing block.
    x2 = jax.random.normal(jax.random.PRNGKey(1), (3, 40, 40), dtype=jnp.float32)
    y2 = bound_sigmoid(x2, out_range)
    jax.block_until_ready(y2)
    y2_ref = jax.nn.sigmoid(x2) * scale + out_range[0]
    assert y2.shape == x2.shape and y2.dtype == x2.dtype
    assert jnp.allclose(y2, y2_ref, atol=1e-6, rtol=1e-6)

    print("KERNEL_OK")
</pallas_src>

<mosaic_0001>
module attributes {stable_mosaic.version = 11 : i64} {
  func.func @_bound_sigmoid_kernel(%arg0: i32, %arg1: memref<8x256xf32, #tpu.memory_space<vmem>>, %arg2: memref<8x256xf32, #tpu.memory_space<vmem>>) attributes {dimension_semantics = [#tpu.dimension_semantics<parallel>], iteration_bounds = array<i64: 1>, scalar_prefetch = 0 : i64, scratch_operands = 0 : i64, tpu.core_type = #tpu.core_type<tc>, window_params = [{transform_indices = @transform_0, window_bounds = array<i64: 8, 256>}, {transform_indices = @transform_1, window_bounds = array<i64: 8, 256>}]} {
    %c0 = arith.constant 0 : index
    %c0_0 = arith.constant 0 : index
    %0 = vector.load %arg1[%c0, %c0_0] : memref<8x256xf32, #tpu.memory_space<vmem>>, vector<8x256xf32>
    %1 = arith.negf %0 : vector<8x256xf32>
    %2 = math.exp %1 : vector<8x256xf32>
    %cst = arith.constant 1.000000e+00 : f32
    %3 = vector.broadcast %cst : f32 to vector<8x256xf32>
    %4 = arith.addf %3, %2 : vector<8x256xf32>
    %5 = arith.divf %3, %4 : vector<8x256xf32>
    %cst_1 = arith.constant 4.000000e+00 : f32
    %6 = vector.broadcast %cst_1 : f32 to vector<8x256xf32>
    %7 = arith.mulf %5, %6 : vector<8x256xf32>
    %cst_2 = arith.constant -1.500000e+00 : f32
    %8 = vector.broadcast %cst_2 : f32 to vector<8x256xf32>
    %9 = arith.addf %7, %8 : vector<8x256xf32>
    %c0_3 = arith.constant 0 : index
    %c0_4 = arith.constant 0 : index
    %10 = vector.load %arg2[%c0_3, %c0_4] : memref<8x256xf32, #tpu.memory_space<vmem>>, vector<8x256xf32>
    tpu.vector_store %arg2[%c0_3, %c0_4], %9 {strides = array<i32>} : memref<8x256xf32, #tpu.memory_space<vmem>>, vector<8x256xf32>,
    return
  }
  func.func @transform_0(%arg0: i32) -> (i32, i32) {
    %c0_i32 = arith.constant 0 : i32
    %c0_i32_0 = arith.constant 0 : i32
    return %arg0, %c0_i32 : i32, i32
  }
  func.func @transform_1(%arg0: i32) -> (i32, i32) {
    %c0_i32 = arith.constant 0 : i32
    %c0_i32_0 = arith.constant 0 : i32
    return %arg0, %c0_i32 : i32, i32
  }
}

</mosaic_0001>

<bundles_post_ra>
// kernel: tpu_custom_call.1
= control target key start
LH: loop header
LB: loop body
LE: loop exit
PB: predicated region body
PF: predicated region fallthrough
CT: control target
= control target key end

     0   :  { %6 = vsyncpa [#allocation3], 0  ;;  %s152_s0 = inlined_call_operand.hbm [shape: f32[8,256], index: 0, kind: input, shape index: {}]   ;;  %s153_s1 = inlined_call_operand.hbm [shape: f32[8,256], index: 1, kind: output, shape index: {}]  }
   0x1   :  { %7 = vsyncpa [#allocation4], 0  ;;  %s116_s6 = smov [#allocation2]   ;;  %s68_s10 = scalar_lea.hbm %s152_s0, 256 }
   0x2   :  { %s14_s7 = sshll.u32 %s116_s6, 4  ;;  %p69_p0 = scmp.ne.s32.totalorder %s152_s0, %s68_s10  ;;  %s15_s7 = int_to_ptr.vmem [resolvable:$true] %s14_s7 }
   0x3   :  { %p72_p1 = scmp.lt.u32.totalorder %s68_s10, %s152_s0 }
   0x5   :  { %p74_p2 = pnand %p72_p1, %p69_p0 }
   0x7   :  { %77 = shalt.err (!%p74_p2)
}
   0x8   :  { %s78_s15 = scalar_lea.vmem %s15_s7, 256  ;;  %p83_p4 = scmp.lt.s32.totalorder %s15_s7, %s15_s7 }
   0x9   :  { %p79_p3 = scmp.ne.s32.totalorder %s15_s7, %s78_s15  ;;  %p84_p5 = scmp.lt.s32.totalorder %s78_s15, %s78_s15 }
   0xb   :  { %p85_p6 = por %p84_p5, %p83_p4 }
   0xd   :  { %p86_p7 = pnand %p85_p6, %p79_p3 }
   0xf   :  { %89 = shalt.err (!%p86_p7)
}
  0x10   :  { %17 = dma.hbm_to_vmem [thread:$0]  %s152_s0, 256, %s15_s7, [#allocation3]  }
  0x11   :  { %112 = dma.done.wait [#allocation3], 256  }
  0x12   :  { %113 = vsyncadd [#allocation3], 4294967040  ;;  %v21_v0 = vld [vmem:[#allocation2] sm:$0xff]  ;;  %v22_v1 = vld [vmem:[#allocation2 + $0x8] sm:$0xff]  ;;  %s117_s18 = smov [#allocation5]  }
  0x13   :  { %v56_v2 = vmul.f32 -1.442695, %v21_v0  ;;  %v57_v3 = vmul.f32 -1.442695, %v22_v1  ;;  %s47_s19 = sshll.u32 %s117_s18, 4  ;;  %s48_s19 = int_to_ptr.vmem [resolvable:$true] %s47_s19 }
  0x14   :  { %s90_s0 = scalar_lea.vmem %s48_s19, 256  ;;  %p95_p9 = scmp.lt.s32.totalorder %s48_s19, %s48_s19 }
  0x15   :  { %60 = vpow2.f32 %v56_v2  ;;  %p91_p8 = scmp.ne.s32.totalorder %s48_s19, %s90_s0  ;;  %p96_p10 = scmp.lt.s32.totalorder %s90_s0, %s90_s0 }
  0x16   :  { %62 = vpow2.f32 %v57_v3 }
  0x17   :  { %p97_p11 = por %p96_p10, %p95_p9 }
  0x19   :  { %p98_p12 = pnand %p97_p11, %p91_p8 }
  0x1f   :  { %v61_v4 = vpop.eup %60 }
  0x20   :  { %v63_v5 = vpop.eup %62  ;;  %v29_v6 = vadd.f32 1.0, %v61_v4 }
  0x21   :  { %v30_v7 = vadd.f32 1.0, %v63_v5 }
  0x22   :  { %64 = vrcp.f32 %v29_v6 }
  0x23   :  { %66 = vrcp.f32 %v30_v7 }
  0x2c   :  { %v65_v8 = vpop.eup %64 }
  0x2d   :  { %v67_v9 = vpop.eup %66  ;;  %v35_v10 = vmul.f32 4.0, %v65_v8 }
  0x2e   :  { %v36_v11 = vmul.f32 4.0, %v67_v9 }
  0x2f   :  { %v37_v12 = vadd.f32 -1.5, %v35_v10 }
  0x30   :  { %v38_v13 = vadd.f32 -1.5, %v36_v11 }
  0x31   :  { %39 = vst [vmem:[#allocation5] sm:$0xff] %v37_v12 }
  0x32   :  { %40 = vst [vmem:[#allocation5 + $0x8] sm:$0xff] %v38_v13 }
  0x33   :  { %101 = shalt.err (!%p98_p12)
}
  0x34   :  { %s102_s22 = scalar_lea.hbm %s153_s1, 256 }
  0x35   :  { %p103_p13 = scmp.ne.s32.totalorder %s153_s1, %s102_s22  ;;  %p106_p0 = scmp.lt.u32.totalorder %s102_s22, %s153_s1 }
  0x37   :  { %p108_p1 = pnand %p106_p0, %p103_p13 }
  0x39   :  { %111 = shalt.err (!%p108_p1)
}
  0x3a   :  { %50 = dma.vmem_to_hbm [thread:$0]  %s48_s19, 256, %s153_s1, [#allocation4]  }
  0x3b   :  { %114 = dma.done.wait [#allocation4], 256  }
  0x3c   :  { %115 = vsyncadd [#allocation4], 4294967040 }
  0x3d   :  { %54 = vsyncpa [#allocation3], 1 }
  0x3e   :  { %55 = vsyncpa [#allocation4], 1 }

</bundles_post_ra>
